<compile_context>
chip_gen: v6e
topology: v6e:2x2x1
jax: 0.10.0
libtpu: 0.0.40
codegen_flags: <defaults>
</compile_context>

<pallas_src>
import math
from functools import partial

import jax
import jax.numpy as jnp
import numpy as np
from jax.experimental import pallas as pl
from jax.experimental.pallas import tpu as pltpu


# ----------------------------- Pallas kernel -------------------------------

def _process_layer_kernel(x_ref, wqkv_ref, bqkv_ref, woh_ref, bo_ref,
                          gamma_ref, beta_ref, o_ref,
                          *, bt, N, D, heads, dh, eps, mxu_dtype, approx):
    x = x_ref[...]                                   # (bt*N, D) f32
    scale = 1.0 / math.sqrt(dh)

    # --- fused Q/K/V projection: one (bt*N, D) x (D, 3D) MXU matmul ---------
    qkv = jnp.dot(x.astype(mxu_dtype), wqkv_ref[...],
                  preferred_element_type=jnp.float32) + bqkv_ref[...]   # (bt*N, 3D) f32

    wo_h = woh_ref[...]                              # (H, dh, D) mxu_dtype

    # --- per-batch attention (scores must stay batch-local) -----------------
    attended_parts = []
    for b in range(bt):                              # static, bt is tiny
        blk = qkv[b * N:(b + 1) * N, :]              # (N, 3D)
        # head-major (H, N, dh) operands -> single batched contraction per step
        q3 = jnp.stack([blk[:, 0 * D + h * dh:0 * D + (h + 1) * dh]
                        for h in range(heads)], axis=0).astype(mxu_dtype)
        k3 = jnp.stack([blk[:, 1 * D + h * dh:1 * D + (h + 1) * dh]
                        for h in range(heads)], axis=0).astype(mxu_dtype)
        v3 = jnp.stack([blk[:, 2 * D + h * dh:2 * D + (h + 1) * dh]
                        for h in range(heads)], axis=0).astype(mxu_dtype)

        s = jnp.einsum('hqd,hkd->hqk', q3, k3,
                       preferred_element_type=jnp.float32) * scale       # (H, N, N) f32
        s = s - jnp.max(s, axis=-1, keepdims=True)
        p = jnp.exp(s)
        p = p * pl.reciprocal(jnp.sum(p, axis=-1, keepdims=True), approx=approx)

        o3 = jnp.einsum('hqk,hkd->hqd', p.astype(mxu_dtype), v3,
                        preferred_element_type=jnp.float32)               # (H, N, dh)

        # output projection per head + sum over heads
        # (== concat(heads) @ W_o, but without a lane-axis concatenate)
        per_head = jnp.einsum('hqd,hde->hqe', o3.astype(mxu_dtype), wo_h,
                              preferred_element_type=jnp.float32)         # (H, N, D)
        attended_parts.append(jnp.sum(per_head, axis=0))                  # (N, D)

    attended = (attended_parts[0] if bt == 1
                else jnp.concatenate(attended_parts, axis=0))             # (bt*N, D)
    attended = attended + bo_ref[...]

    # --- residual + LayerNorm (f32 VPU math) --------------------------------
    y = attended + x
    mean = jnp.mean(y, axis=-1, keepdims=True)
    var = jnp.mean((y - mean) ** 2, axis=-1, keepdims=True)
    out = (y - mean) * jax.lax.rsqrt(var + eps) * gamma_ref[...] + beta_ref[...]

    # Dropout(p=0.0) is the identity.
    o_ref[...] = out.astype(o_ref.dtype)


# ------------------------------- wrapper ------------------------------------

def perceiver_io_process_layer(x, params, *, heads, eps=1e-5,
                               precise=False, batch_tile=None):
    """x: [B, N, D] float32.  precise=True -> f32 MXU operands + exact softmax."""
    B, N, D = x.shape
    assert D % heads == 0
    dh = D // heads
    bt = B if batch_tile is None else batch_tile
    assert B % bt == 0

    mxu_dtype = jnp.float32 if precise else jnp.bfloat16

    # Weight prep happens in the wrapper (free relative to the kernel):
    #  - fused (D, 3D) QKV weight / (1, 3D) bias
    #  - per-head output weight (H, dh, D)
    #  - MXU operands pre-cast to bf16 so weight DMA bytes are halved.
    w_qkv = jnp.concatenate([params["wq"], params["wk"], params["wv"]],
                            axis=1).astype(mxu_dtype)                    # (D, 3D)
    b_qkv = jnp.concatenate([params["bq"], params["bk"], params["bv"]],
                            axis=1)                                      # (1, 3D) f32
    wo_h = params["wo"].reshape(heads, dh, D).astype(mxu_dtype)          # (H, dh, D)
    bo, gamma, beta = params["bo"], params["gamma"], params["beta"]

    x2 = x.reshape(B * N, D)       # flatten batch for the projections (free)
    R = bt * N
    grid = (B // bt,)              # default bt=B -> grid=(1,): no per-step overhead

    kernel = partial(_process_layer_kernel, bt=bt, N=N, D=D, heads=heads,
                     dh=dh, eps=eps, mxu_dtype=mxu_dtype, approx=not precise)

    const2 = lambda i: (0, 0)
    out2 = pl.pallas_call(
        kernel,
        out_shape=jax.ShapeDtypeStruct((B * N, D), x.dtype),
        grid_spec=pltpu.PrefetchScalarGridSpec(
            num_scalar_prefetch=0,
            grid=grid,
            in_specs=[
                pl.BlockSpec((R, D), lambda i: (i, 0)),          # x slab
                pl.BlockSpec((D, 3 * D), const2),                # fused QKV weight
                pl.BlockSpec((1, 3 * D), const2),                # fused QKV bias
                pl.BlockSpec((heads, dh, D), lambda i: (0, 0, 0)),  # per-head W_o
                pl.BlockSpec((1, D), const2),                    # b_o
                pl.BlockSpec((1, D), const2),                    # LN gamma
                pl.BlockSpec((1, D), const2),                    # LN beta
            ],
            out_specs=pl.BlockSpec((R, D), lambda i: (i, 0)),
        ),
        compiler_params=pltpu.CompilerParams(
            dimension_semantics=("parallel",)),
    )(x2, w_qkv, b_qkv, wo_h, bo, gamma, beta)

    return out2.reshape(B, N, D)


# --------------------------- reference (plain JAX) ---------------------------

def reference(x, params, *, heads, eps=1e-5):
    B, N, D = x.shape
    dh = D // heads
    q = x @ params["wq"] + params["bq"]
    k = x @ params["wk"] + params["bk"]
    v = x @ params["wv"] + params["bv"]
    q = q.reshape(B, N, heads, dh).transpose(0, 2, 1, 3)
    k = k.reshape(B, N, heads, dh).transpose(0, 2, 1, 3)
    v = v.reshape(B, N, heads, dh).transpose(0, 2, 1, 3)
    s = jnp.einsum("bhqd,bhkd->bhqk", q, k) / math.sqrt(dh)
    p = jax.nn.softmax(s, axis=-1)
    o = jnp.einsum("bhqk,bhkd->bhqd", p, v).transpose(0, 2, 1, 3).reshape(B, N, D)
    attended = o @ params["wo"] + params["bo"]
    y = attended + x
    mean = jnp.mean(y, axis=-1, keepdims=True)
    var = jnp.mean((y - mean) ** 2, axis=-1, keepdims=True)
    return (y - mean) * jax.lax.rsqrt(var + eps) * params["gamma"] + params["beta"]


# ----------------------------------- main ------------------------------------

if __name__ == "__main__":
    # args: encode_out = process_out = 32, heads = 4  (self-attn requires equality)
    B, N, D, HEADS = 2, 8, 32, 4

    key = jax.random.PRNGKey(0)
    keys = jax.random.split(key, 10)

    x = jax.random.normal(keys[0], (B, N, D), dtype=jnp.float32)

    def init_linear(kw, kb):
        w = 0.05 * jax.random.normal(kw, (D, D), dtype=jnp.float32)
        b = 0.01 * jax.random.normal(kb, (1, D), dtype=jnp.float32)
        return w, b

    wq, bq = init_linear(keys[1], keys[2])
    wk, bk = init_linear(keys[3], keys[4])
    wv, bv = init_linear(keys[5], keys[6])
    wo, bo = init_linear(keys[7], keys[8])

    params = dict(
        wq=wq, bq=bq, wk=wk, bk=bk, wv=wv, bv=bv, wo=wo, bo=bo,
        gamma=jnp.ones((1, D), dtype=jnp.float32),   # nn.LayerNorm default init
        beta=jnp.zeros((1, D), dtype=jnp.float32),
    )

    ref = jax.block_until_ready(reference(x, params, heads=HEADS))

    # 1) exact f32 path (validates kernel structure tightly).
    out_precise = jax.block_until_ready(
        perceiver_io_process_layer(x, params, heads=HEADS, precise=True))
    np.testing.assert_allclose(np.asarray(out_precise), np.asarray(ref),
                               rtol=1e-5, atol=1e-5)

    # 2) default fast path: bf16 MXU operands + approx softmax reciprocal.
    out_fast = jax.block_until_ready(
        perceiver_io_process_layer(x, params, heads=HEADS))
    np.testing.assert_allclose(np.asarray(out_fast), np.asarray(ref),
                               rtol=5e-2, atol=5e-2)

    print("KERNEL_OK")
</pallas_src>

<mosaic_0001>
module attributes {stable_mosaic.version = 11 : i64} {
  func.func @_process_layer_kernel(%arg0: i32, %arg1: memref<16x32xf32, #tpu.memory_space<vmem>>, %arg2: memref<32x96xf32, #tpu.memory_space<vmem>>, %arg3: memref<1x96xf32, #tpu.memory_space<vmem>>, %arg4: memref<4x8x32xf32, #tpu.memory_space<vmem>>, %arg5: memref<1x32xf32, #tpu.memory_space<vmem>>, %arg6: memref<1x32xf32, #tpu.memory_space<vmem>>, %arg7: memref<1x32xf32, #tpu.memory_space<vmem>>, %arg8: memref<16x32xf32, #tpu.memory_space<vmem>>) attributes {dimension_semantics = [#tpu.dimension_semantics<parallel>], iteration_bounds = array<i64: 1>, scalar_prefetch = 0 : i64, scratch_operands = 0 : i64, tpu.core_type = #tpu.core_type<tc>, window_params = [{transform_indices = @transform_0, window_bounds = array<i64: 16, 32>}, {pipeline_mode = #tpu.pipeline_mode<synchronous>, transform_indices = @transform_1, window_bounds = array<i64: 32, 96>}, {pipeline_mode = #tpu.pipeline_mode<synchronous>, transform_indices = @transform_2, window_bounds = array<i64: 1, 96>}, {pipeline_mode = #tpu.pipeline_mode<synchronous>, transform_indices = @transform_3, window_bounds = array<i64: 4, 8, 32>}, {pipeline_mode = #tpu.pipeline_mode<synchronous>, transform_indices = @transform_4, window_bounds = array<i64: 1, 32>}, {pipeline_mode = #tpu.pipeline_mode<synchronous>, transform_indices = @transform_5, window_bounds = array<i64: 1, 32>}, {pipeline_mode = #tpu.pipeline_mode<synchronous>, transform_indices = @transform_6, window_bounds = array<i64: 1, 32>}, {transform_indices = @transform_7, window_bounds = array<i64: 16, 32>}]} {
    %c0 = arith.constant 0 : index
    %c0_0 = arith.constant 0 : index
    %0 = vector.load %arg1[%c0, %c0_0] : memref<16x32xf32, #tpu.memory_space<vmem>>, vector<16x32xf32>
    %c0_1 = arith.constant 0 : index
    %c0_2 = arith.constant 0 : index
    %1 = vector.load %arg2[%c0_1, %c0_2] : memref<32x96xf32, #tpu.memory_space<vmem>>, vector<32x96xf32>
    %cst = arith.constant dense<0.000000e+00> : vector<16x96xf32>
    %2 = tpu.matmul %0, %1, %cst {dimension_numbers = #tpu.dot_dimension_numbers<[1], [0], [0], [1], [0, 0, 1, 1], [], []>} : vector<16x32xf32>, vector<32x96xf32>, vector<16x96xf32> -> vector<16x96xf32>
    %c0_3 = arith.constant 0 : index
    %c0_4 = arith.constant 0 : index
    %3 = vector.load %arg3[%c0_3, %c0_4] : memref<1x96xf32, #tpu.memory_space<vmem>>, vector<1x96xf32>
    %4 = vector.broadcast %3 : vector<1x96xf32> to vector<16x96xf32>
    %5 = arith.addf %2, %4 : vector<16x96xf32>
    %c0_5 = arith.constant 0 : index
    %c0_6 = arith.constant 0 : index
    %c0_7 = arith.constant 0 : index
    %6 = vector.load %arg4[%c0_5, %c0_6, %c0_7] : memref<4x8x32xf32, #tpu.memory_space<vmem>>, vector<4x8x32xf32>
    %7 = vector.extract_strided_slice %5 {offsets = [0, 0], sizes = [8, 96], strides = [1, 1]} : vector<16x96xf32> to vector<8x96xf32>
    %8 = vector.extract_strided_slice %7 {offsets = [0, 0], sizes = [8, 8], strides = [1, 1]} : vector<8x96xf32> to vector<8x8xf32>
    %9 = vector.extract_strided_slice %7 {offsets = [0, 8], sizes = [8, 8], strides = [1, 1]} : vector<8x96xf32> to vector<8x8xf32>
    %10 = vector.extract_strided_slice %7 {offsets = [0, 16], sizes = [8, 8], strides = [1, 1]} : vector<8x96xf32> to vector<8x8xf32>
    %11 = vector.extract_strided_slice %7 {offsets = [0, 24], sizes = [8, 8], strides = [1, 1]} : vector<8x96xf32> to vector<8x8xf32>
    %12 = vector.shape_cast %8 : vector<8x8xf32> to vector<1x8x8xf32>
    %13 = vector.shape_cast %9 : vector<8x8xf32> to vector<1x8x8xf32>
    %14 = vector.shape_cast %10 : vector<8x8xf32> to vector<1x8x8xf32>
    %15 = vector.shape_cast %11 : vector<8x8xf32> to vector<1x8x8xf32>
    %16 = tpu.concatenate %12, %13, %14, %15 in 0 : vector<1x8x8xf32>, vector<1x8x8xf32>, vector<1x8x8xf32>, vector<1x8x8xf32> -> vector<4x8x8xf32>
    %17 = vector.extract_strided_slice %7 {offsets = [0, 32], sizes = [8, 8], strides = [1, 1]} : vector<8x96xf32> to vector<8x8xf32>
    %18 = vector.extract_strided_slice %7 {offsets = [0, 40], sizes = [8, 8], strides = [1, 1]} : vector<8x96xf32> to vector<8x8xf32>
    %19 = vector.extract_strided_slice %7 {offsets = [0, 48], sizes = [8, 8], strides = [1, 1]} : vector<8x96xf32> to vector<8x8xf32>
    %20 = vector.extract_strided_slice %7 {offsets = [0, 56], sizes = [8, 8], strides = [1, 1]} : vector<8x96xf32> to vector<8x8xf32>
    %21 = vector.shape_cast %17 : vector<8x8xf32> to vector<1x8x8xf32>
    %22 = vector.shape_cast %18 : vector<8x8xf32> to vector<1x8x8xf32>
    %23 = vector.shape_cast %19 : vector<8x8xf32> to vector<1x8x8xf32>
    %24 = vector.shape_cast %20 : vector<8x8xf32> to vector<1x8x8xf32>
    %25 = tpu.concatenate %21, %22, %23, %24 in 0 : vector<1x8x8xf32>, vector<1x8x8xf32>, vector<1x8x8xf32>, vector<1x8x8xf32> -> vector<4x8x8xf32>
    %26 = vector.extract_strided_slice %7 {offsets = [0, 64], sizes = [8, 8], strides = [1, 1]} : vector<8x96xf32> to vector<8x8xf32>
    %27 = vector.extract_strided_slice %7 {offsets = [0, 72], sizes = [8, 8], strides = [1, 1]} : vector<8x96xf32> to vector<8x8xf32>
    %28 = vector.extract_strided_slice %7 {offsets = [0, 80], sizes = [8, 8], strides = [1, 1]} : vector<8x96xf32> to vector<8x8xf32>
    %29 = vector.extract_strided_slice %7 {offsets = [0, 88], sizes = [8, 8], strides = [1, 1]} : vector<8x96xf32> to vector<8x8xf32>
    %30 = vector.shape_cast %26 : vector<8x8xf32> to vector<1x8x8xf32>
    %31 = vector.shape_cast %27 : vector<8x8xf32> to vector<1x8x8xf32>
    %32 = vector.shape_cast %28 : vector<8x8xf32> to vector<1x8x8xf32>
    %33 = vector.shape_cast %29 : vector<8x8xf32> to vector<1x8x8xf32>
    %34 = tpu.concatenate %30, %31, %32, %33 in 0 : vector<1x8x8xf32>, vector<1x8x8xf32>, vector<1x8x8xf32>, vector<1x8x8xf32> -> vector<4x8x8xf32>
    "tpu.trace_start"() <{level = 10 : i32, message = "hqd,hkd->hqk"}> : () -> ()
    %cst_8 = arith.constant dense<0.000000e+00> : vector<4x8x8xf32>
    %35 = tpu.matmul %16, %25, %cst_8 {dimension_numbers = #tpu.dot_dimension_numbers<[2], [2], [1], [1], [0, 0, 0, 1, 1, 1], [0], [0]>} : vector<4x8x8xf32>, vector<4x8x8xf32>, vector<4x8x8xf32> -> vector<4x8x8xf32>
    "tpu.trace_stop"() : () -> ()
    %cst_9 = arith.constant 0.353553385 : f32
    %36 = vector.broadcast %cst_9 : f32 to vector<4x8x8xf32>
    %37 = arith.mulf %35, %36 : vector<4x8x8xf32>
    %cst_10 = arith.constant dense<0xFF800000> : vector<4x8xf32>
    %38 = vector.multi_reduction <maximumf>, %37, %cst_10 [2] : vector<4x8x8xf32> to vector<4x8xf32>
    %39 = vector.shape_cast %38 : vector<4x8xf32> to vector<4x8x1xf32>
    %40 = vector.broadcast %39 : vector<4x8x1xf32> to vector<4x8x8xf32>
    %41 = arith.subf %37, %40 : vector<4x8x8xf32>
    %42 = math.exp %41 : vector<4x8x8xf32>
    %cst_11 = arith.constant dense<0.000000e+00> : vector<4x8xf32>
    %43 = vector.multi_reduction <add>, %42, %cst_11 [2] : vector<4x8x8xf32> to vector<4x8xf32>
    %44 = vector.shape_cast %43 : vector<4x8xf32> to vector<4x8x1xf32>
    %45 = tpu.reciprocal %44 : vector<4x8x1xf32> -> vector<4x8x1xf32>
    %46 = vector.broadcast %45 : vector<4x8x1xf32> to vector<4x8x8xf32>
    %47 = arith.mulf %42, %46 : vector<4x8x8xf32>
    "tpu.trace_start"() <{level = 10 : i32, message = "hqk,hkd->hqd"}> : () -> ()
    %cst_12 = arith.constant dense<0.000000e+00> : vector<4x8x8xf32>
    %48 = tpu.matmul %47, %34, %cst_12 {dimension_numbers = #tpu.dot_dimension_numbers<[2], [1], [1], [2], [0, 0, 0, 1, 1, 2], [0], [0]>} : vector<4x8x8xf32>, vector<4x8x8xf32>, vector<4x8x8xf32> -> vector<4x8x8xf32>
    "tpu.trace_stop"() : () -> ()
    "tpu.trace_start"() <{level = 10 : i32, message = "hqd,hde->hqe"}> : () -> ()
    %cst_13 = arith.constant dense<0.000000e+00> : vector<4x8x32xf32>
    %49 = tpu.matmul %48, %6, %cst_13 {dimension_numbers = #tpu.dot_dimension_numbers<[2], [1], [1], [2], [0, 0, 0, 1, 1, 2], [0], [0]>} : vector<4x8x8xf32>, vector<4x8x32xf32>, vector<4x8x32xf32> -> vector<4x8x32xf32>
    "tpu.trace_stop"() : () -> ()
    %cst_14 = arith.constant dense<0.000000e+00> : vector<8x32xf32>
    %50 = vector.multi_reduction <add>, %49, %cst_14 [0] : vector<4x8x32xf32> to vector<8x32xf32>
    %51 = vector.extract_strided_slice %5 {offsets = [8, 0], sizes = [8, 96], strides = [1, 1]} : vector<16x96xf32> to vector<8x96xf32>
    %52 = vector.extract_strided_slice %51 {offsets = [0, 0], sizes = [8, 8], strides = [1, 1]} : vector<8x96xf32> to vector<8x8xf32>
    %53 = vector.extract_strided_slice %51 {offsets = [0, 8], sizes = [8, 8], strides = [1, 1]} : vector<8x96xf32> to vector<8x8xf32>
    %54 = vector.extract_strided_slice %51 {offsets = [0, 16], sizes = [8, 8], strides = [1, 1]} : vector<8x96xf32> to vector<8x8xf32>
    %55 = vector.extract_strided_slice %51 {offsets = [0, 24], sizes = [8, 8], strides = [1, 1]} : vector<8x96xf32> to vector<8x8xf32>
    %56 = vector.shape_cast %52 : vector<8x8xf32> to vector<1x8x8xf32>
    %57 = vector.shape_cast %53 : vector<8x8xf32> to vector<1x8x8xf32>
    %58 = vector.shape_cast %54 : vector<8x8xf32> to vector<1x8x8xf32>
    %59 = vector.shape_cast %55 : vector<8x8xf32> to vector<1x8x8xf32>
    %60 = tpu.concatenate %56, %57, %58, %59 in 0 : vector<1x8x8xf32>, vector<1x8x8xf32>, vector<1x8x8xf32>, vector<1x8x8xf32> -> vector<4x8x8xf32>
    %61 = vector.extract_strided_slice %51 {offsets = [0, 32], sizes = [8, 8], strides = [1, 1]} : vector<8x96xf32> to vector<8x8xf32>
    %62 = vector.extract_strided_slice %51 {offsets = [0, 40], sizes = [8, 8], strides = [1, 1]} : vector<8x96xf32> to vector<8x8xf32>
    %63 = vector.extract_strided_slice %51 {offsets = [0, 48], sizes = [8, 8], strides = [1, 1]} : vector<8x96xf32> to vector<8x8xf32>
    %64 = vector.extract_strided_slice %51 {offsets = [0, 56], sizes = [8, 8], strides = [1, 1]} : vector<8x96xf32> to vector<8x8xf32>
    %65 = vector.shape_cast %61 : vector<8x8xf32> to vector<1x8x8xf32>
    %66 = vector.shape_cast %62 : vector<8x8xf32> to vector<1x8x8xf32>
    %67 = vector.shape_cast %63 : vector<8x8xf32> to vector<1x8x8xf32>
    %68 = vector.shape_cast %64 : vector<8x8xf32> to vector<1x8x8xf32>
    %69 = tpu.concatenate %65, %66, %67, %68 in 0 : vector<1x8x8xf32>, vector<1x8x8xf32>, vector<1x8x8xf32>, vector<1x8x8xf32> -> vector<4x8x8xf32>
    %70 = vector.extract_strided_slice %51 {offsets = [0, 64], sizes = [8, 8], strides = [1, 1]} : vector<8x96xf32> to vector<8x8xf32>
    %71 = vector.extract_strided_slice %51 {offsets = [0, 72], sizes = [8, 8], strides = [1, 1]} : vector<8x96xf32> to vector<8x8xf32>
    %72 = vector.extract_strided_slice %51 {offsets = [0, 80], sizes = [8, 8], strides = [1, 1]} : vector<8x96xf32> to vector<8x8xf32>
    %73 = vector.extract_strided_slice %51 {offsets = [0, 88], sizes = [8, 8], strides = [1, 1]} : vector<8x96xf32> to vector<8x8xf32>
    %74 = vector.shape_cast %70 : vector<8x8xf32> to vector<1x8x8xf32>
    %75 = vector.shape_cast %71 : vector<8x8xf32> to vector<1x8x8xf32>
    %76 = vector.shape_cast %72 : vector<8x8xf32> to vector<1x8x8xf32>
    %77 = vector.shape_cast %73 : vector<8x8xf32> to vector<1x8x8xf32>
    %78 = tpu.concatenate %74, %75, %76, %77 in 0 : vector<1x8x8xf32>, vector<1x8x8xf32>, vector<1x8x8xf32>, vector<1x8x8xf32> -> vector<4x8x8xf32>
    "tpu.trace_start"() <{level = 10 : i32, message = "hqd,hkd->hqk"}> : () -> ()
    %cst_15 = arith.constant dense<0.000000e+00> : vector<4x8x8xf32>
    %79 = tpu.matmul %60, %69, %cst_15 {dimension_numbers = #tpu.dot_dimension_numbers<[2], [2], [1], [1], [0, 0, 0, 1, 1, 1], [0], [0]>} : vector<4x8x8xf32>, vector<4x8x8xf32>, vector<4x8x8xf32> -> vector<4x8x8xf32>
    "tpu.trace_stop"() : () -> ()
    %cst_16 = arith.constant 0.353553385 : f32
    %80 = vector.broadcast %cst_16 : f32 to vector<4x8x8xf32>
    %81 = arith.mulf %79, %80 : vector<4x8x8xf32>
    %cst_17 = arith.constant dense<0xFF800000> : vector<4x8xf32>
    %82 = vector.multi_reduction <maximumf>, %81, %cst_17 [2] : vector<4x8x8xf32> to vector<4x8xf32>
    %83 = vector.shape_cast %82 : vector<4x8xf32> to vector<4x8x1xf32>
    %84 = vector.broadcast %83 : vector<4x8x1xf32> to vector<4x8x8xf32>
    %85 = arith.subf %81, %84 : vector<4x8x8xf32>
    %86 = math.exp %85 : vector<4x8x8xf32>
    %cst_18 = arith.constant dense<0.000000e+00> : vector<4x8xf32>
    %87 = vector.multi_reduction <add>, %86, %cst_18 [2] : vector<4x8x8xf32> to vector<4x8xf32>
    %88 = vector.shape_cast %87 : vector<4x8xf32> to vector<4x8x1xf32>
    %89 = tpu.reciprocal %88 : vector<4x8x1xf32> -> vector<4x8x1xf32>
    %90 = vector.broadcast %89 : vector<4x8x1xf32> to vector<4x8x8xf32>
    %91 = arith.mulf %86, %90 : vector<4x8x8xf32>
    "tpu.trace_start"() <{level = 10 : i32, message = "hqk,hkd->hqd"}> : () -> ()
    %cst_19 = arith.constant dense<0.000000e+00> : vector<4x8x8xf32>
    %92 = tpu.matmul %91, %78, %cst_19 {dimension_numbers = #tpu.dot_dimension_numbers<[2], [1], [1], [2], [0, 0, 0, 1, 1, 2], [0], [0]>} : vector<4x8x8xf32>, vector<4x8x8xf32>, vector<4x8x8xf32> -> vector<4x8x8xf32>
    "tpu.trace_stop"() : () -> ()
    "tpu.trace_start"() <{level = 10 : i32, message = "hqd,hde->hqe"}> : () -> ()
    %cst_20 = arith.constant dense<0.000000e+00> : vector<4x8x32xf32>
    %93 = tpu.matmul %92, %6, %cst_20 {dimension_numbers = #tpu.dot_dimension_numbers<[2], [1], [1], [2], [0, 0, 0, 1, 1, 2], [0], [0]>} : vector<4x8x8xf32>, vector<4x8x32xf32>, vector<4x8x32xf32> -> vector<4x8x32xf32>
    "tpu.trace_stop"() : () -> ()
    %cst_21 = arith.constant dense<0.000000e+00> : vector<8x32xf32>
    %94 = vector.multi_reduction <add>, %93, %cst_21 [0] : vector<4x8x32xf32> to vector<8x32xf32>
    %95 = tpu.concatenate %50, %94 in 0 : vector<8x32xf32>, vector<8x32xf32> -> vector<16x32xf32>
    %c0_22 = arith.constant 0 : index
    %c0_23 = arith.constant 0 : index
    %96 = vector.load %arg5[%c0_22, %c0_23] : memref<1x32xf32, #tpu.memory_space<vmem>>, vector<1x32xf32>
    %97 = vector.broadcast %96 : vector<1x32xf32> to vector<16x32xf32>
    %98 = arith.addf %95, %97 : vector<16x32xf32>
    %99 = arith.addf %98, %0 : vector<16x32xf32>
    %cst_24 = arith.constant dense<0.000000e+00> : vector<16xf32>
    %100 = vector.multi_reduction <add>, %99, %cst_24 [1] : vector<16x32xf32> to vector<16xf32>
    %101 = vector.shape_cast %100 : vector<16xf32> to vector<16x1xf32>
    %cst_25 = arith.constant 3.200000e+01 : f32
    %102 = vector.broadcast %cst_25 : f32 to vector<16x1xf32>
    %103 = arith.divf %101, %102 : vector<16x1xf32>
    %104 = vector.broadcast %103 : vector<16x1xf32> to vector<16x32xf32>
    %105 = arith.subf %99, %104 : vector<16x32xf32>
    %106 = arith.mulf %105, %105 : vector<16x32xf32>
    %cst_26 = arith.constant dense<0.000000e+00> : vector<16xf32>
    %107 = vector.multi_reduction <add>, %106, %cst_26 [1] : vector<16x32xf32> to vector<16xf32>
    %108 = vector.shape_cast %107 : vector<16xf32> to vector<16x1xf32>
    %cst_27 = arith.constant 3.200000e+01 : f32
    %109 = vector.broadcast %cst_27 : f32 to vector<16x1xf32>
    %110 = arith.divf %108, %109 : vector<16x1xf32>
    %111 = vector.broadcast %103 : vector<16x1xf32> to vector<16x32xf32>
    %112 = arith.subf %99, %111 : vector<16x32xf32>
    %cst_28 = arith.constant 9.99999974E-6 : f32
    %113 = vector.broadcast %cst_28 : f32 to vector<16x1xf32>
    %114 = arith.addf %110, %113 : vector<16x1xf32>
    %115 = math.rsqrt %114 : vector<16x1xf32>
    %116 = vector.broadcast %115 : vector<16x1xf32> to vector<16x32xf32>
    %117 = arith.mulf %112, %116 : vector<16x32xf32>
    %c0_29 = arith.constant 0 : index
    %c0_30 = arith.constant 0 : index
    %118 = vector.load %arg6[%c0_29, %c0_30] : memref<1x32xf32, #tpu.memory_space<vmem>>, vector<1x32xf32>
    %119 = vector.broadcast %118 : vector<1x32xf32> to vector<16x32xf32>
    %120 = arith.mulf %117, %119 : vector<16x32xf32>
    %c0_31 = arith.constant 0 : index
    %c0_32 = arith.constant 0 : index
    %121 = vector.load %arg7[%c0_31, %c0_32] : memref<1x32xf32, #tpu.memory_space<vmem>>, vector<1x32xf32>
    %122 = vector.broadcast %121 : vector<1x32xf32> to vector<16x32xf32>
    %123 = arith.addf %120, %122 : vector<16x32xf32>
    %c0_33 = arith.constant 0 : index
    %c0_34 = arith.constant 0 : index
    %124 = vector.load %arg8[%c0_33, %c0_34] : memref<16x32xf32, #tpu.memory_space<vmem>>, vector<16x32xf32>
    tpu.vector_store %arg8[%c0_33, %c0_34], %123 {strides = array<i32>} : memref<16x32xf32, #tpu.memory_space<vmem>>, vector<16x32xf32>,
    return
  }
  func.func @transform_0(%arg0: i32) -> (i32, i32) {
    %c0_i32 = arith.constant 0 : i32
    %c0_i32_0 = arith.constant 0 : i32
    return %arg0, %c0_i32 : i32, i32
  }
  func.func @transform_1(%arg0: i32) -> (i32, i32) {
    %c0_i32 = arith.constant 0 : i32
    %c0_i32_0 = arith.constant 0 : i32
    %c0_i32_1 = arith.constant 0 : i32
    return %c0_i32, %c0_i32_0 : i32, i32
  }
  func.func @transform_2(%arg0: i32) -> (i32, i32) {
    %c0_i32 = arith.constant 0 : i32
    %c0_i32_0 = arith.constant 0 : i32
    %c0_i32_1 = arith.constant 0 : i32
    return %c0_i32, %c0_i32_0 : i32, i32
  }
  func.func @transform_3(%arg0: i32) -> (i32, i32, i32) {
    %c0_i32 = arith.constant 0 : i32
    %c0_i32_0 = arith.constant 0 : i32
    %c0_i32_1 = arith.constant 0 : i32
    %c0_i32_2 = arith.constant 0 : i32
    return %c0_i32, %c0_i32_0, %c0_i32_1 : i32, i32, i32
  }
  func.func @transform_4(%arg0: i32) -> (i32, i32) {
    %c0_i32 = arith.constant 0 : i32
    %c0_i32_0 = arith.constant 0 : i32
    %c0_i32_1 = arith.constant 0 : i32
    return %c0_i32, %c0_i32_0 : i32, i32
  }
  func.func @transform_5(%arg0: i32) -> (i32, i32) {
    %c0_i32 = arith.constant 0 : i32
    %c0_i32_0 = arith.constant 0 : i32
    %c0_i32_1 = arith.constant 0 : i32
    return %c0_i32, %c0_i32_0 : i32, i32
  }
  func.func @transform_6(%arg0: i32) -> (i32, i32) {
    %c0_i32 = arith.constant 0 : i32
    %c0_i32_0 = arith.constant 0 : i32
    %c0_i32_1 = arith.constant 0 : i32
    return %c0_i32, %c0_i32_0 : i32, i32
  }
  func.func @transform_7(%arg0: i32) -> (i32, i32) {
    %c0_i32 = arith.constant 0 : i32
    %c0_i32_0 = arith.constant 0 : i32
    return %arg0, %c0_i32 : i32, i32
  }
}

</mosaic_0001>

<bundles_post_ra>
// kernel: tpu_custom_call.1
= control target key start
LH: loop header
LB: loop body
LE: loop exit
PB: predicated region body
PF: predicated region fallthrough
CT: control target
= control target key end

     0   :  { %12 = vsyncpa [#allocation3], 0  ;;  %s2834_s0 = inlined_call_operand.hbm [shape: f32[16,32], index: 0, kind: input, shape index: {}]   ;;  %s2835_s1 = inlined_call_operand.hbm [shape: f32[32,96], index: 1, kind: input, shape index: {}]   ;;  %s2836_s2 = inlined_call_operand.vmem [shape: f32[1,96], index: 2, kind: input, shape index: {}]   ;;  %s2837_s3 = inlined_call_operand.hbm [shape: f32[4,8,32], index: 3, kind: input, shape index: {}]   ;;  %s2838_s4 = inlined_call_operand.vmem [shape: f32[1,32], index: 4, kind: input, shape index: {}]   ;;  %s2839_s5 = inlined_call_operand.vmem [shape: f32[1,32], index: 5, kind: input, shape index: {}]   ;;  %s2840_s6 = inlined_call_operand.vmem [shape: f32[1,32], index: 6, kind: input, shape index: {}]   ;;  %s2841_s7 = inlined_call_operand.hbm [shape: f32[16,32], index: 7, kind: output, shape index: {}]  }
   0x1   :  { %13 = vsyncpa [#allocation6], 0 }
   0x2   :  { %14 = vsyncpa [#allocation4], 0  ;;  %s2526_s24 = smov [#allocation5]   ;;  %s2527_s26 = smov [#allocation2]  }
   0x3   :  { %s32_s25 = sshll.u32 %s2526_s24, 4  ;;  %s20_s27 = sshll.u32 %s2527_s26, 4  ;;  %s33_s25 = int_to_ptr.vmem [resolvable:$true] %s32_s25  ;;  %s21_s27 = int_to_ptr.vmem [resolvable:$true] %s20_s27 }
   0x4   :  { %s2448_s28 = scalar_lea.vmem %s33_s25, 512  ;;  %p2453_p1 = scmp.lt.s32.totalorder %s33_s25, %s33_s25 }
   0x5   :  { %p2449_p0 = scmp.ne.s32.totalorder %s33_s25, %s2448_s28  ;;  %p2454_p2 = scmp.lt.s32.totalorder %s2448_s28, %s2448_s28 }
   0x7   :  { %p2455_p3 = por %p2454_p2, %p2453_p1 }
   0x9   :  { %p2456_p4 = pnand %p2455_p3, %p2449_p0 }
   0xb   :  { %2459 = shalt.err (!%p2456_p4)
}
   0xc   :  { %s2528_s29 = smov 128   ;;  %s2529_s30 = smov 8  }
   0xd   :  { %38 = dma.hbm_to_vmem [thread:$0]  %s2835_s1, 512, %s33_s25, [#allocation6], %s2528_s29, %s2528_s29, %s2529_s30  }
   0xe   :  { %s2468_s10 = scalar_lea.vmem %s21_s27, 256  ;;  %p2473_p6 = scmp.lt.s32.totalorder %s21_s27, %s21_s27 }
   0xf   :  { %p2469_p5 = scmp.ne.s32.totalorder %s21_s27, %s2468_s10  ;;  %p2474_p7 = scmp.lt.s32.totalorder %s2468_s10, %s2468_s10 }
  0x11   :  { %p2475_p8 = por %p2474_p7, %p2473_p6 }
  0x13   :  { %p2476_p9 = pnand %p2475_p8, %p2469_p5 }
  0x15   :  { %2479 = shalt.err (!%p2476_p9)
}
  0x16   :  { %26 = dma.hbm_to_vmem [thread:$0]  %s2834_s0, 256, %s21_s27, [#allocation3], %s2528_s29, %s2528_s29, %s2529_s30  }
  0x17   :  { %s2530_s13 = smov [#allocation7]  }
  0x18   :  { %s46_s14 = sshll.u32 %s2530_s13, 4  ;;  %s47_s14 = int_to_ptr.vmem [resolvable:$true] %s46_s14 }
  0x19   :  { %s2488_s15 = scalar_lea.vmem %s47_s14, 512  ;;  %p2493_p11 = scmp.lt.s32.totalorder %s47_s14, %s47_s14 }
  0x1a   :  { %p2489_p10 = scmp.ne.s32.totalorder %s47_s14, %s2488_s15  ;;  %p2494_p12 = scmp.lt.s32.totalorder %s2488_s15, %s2488_s15 }
  0x1c   :  { %p2495_p13 = por %p2494_p12, %p2493_p11 }
  0x1e   :  { %p2496_p0 = pnand %p2495_p13, %p2489_p10 }
  0x20   :  { %2499 = shalt.err (!%p2496_p0)
}
  0x21   :  { %52 = dma.hbm_to_vmem [thread:$0]  %s2837_s3, 512, %s47_s14, [#allocation6], %s2528_s29, %s2528_s29, %s2529_s30  }
  0x22   :  { %2520 = dma.done.wait [#allocation3], 256  }
  0x23   :  { %2521 = vsyncadd [#allocation3], 4294967040 }
  0x24   :  { %2522 = dma.done.wait [#allocation6], 1024  }
  0x25   :  { %2523 = vsyncadd [#allocation6], 4294966272  ;;  %vm81_vm0 = vcmask 261120   ;;  %v73_v0 = vld [vmem:[#allocation5 + $0x18] sm:$0xff]  ;;  %v72_v1 = vld [vmem:[#allocation5 + $0x10] sm:$0xff]  ;;  %v2531_v6 = vmov 0.0  }
  0x26   :  { %2260 = vmatprep.subr.mxu0 %v73_v0  ;;  %v2597_v2 = vld [vmem:[#allocation2] sm:$0xff]  ;;  %v71_v3 = vld [vmem:[#allocation5 + $0x8] sm:$0xff]  ;;  %v70_v4 = vld [vmem:[#allocation5] sm:$0xff]  ;;  %2271 = vmatprep.subr.mxu1 %v2531_v6  ;;  %vm2532_vm1 = vmmov 0   ;;  %s2533_s17 = smov 104   ;;  %s2534_s18 = smov 120  }
  0x27   :  { %2261 = vmatpush3.msra.mxu0 %v73_v0  ;;  %2268 = vmatprep.mubr.msk.f32.mxu0 %vm81_vm0, %v2597_v2  ;;  %v2601_v5 = vld [vmem:[#allocation2 + $0x8] sm:$0xff]  ;;  %v2168_v7 = vld [vmem:[%s2836_s2] ss:$0 sm:$0xff]  ;;  %s2535_s19 = smov 96   ;;  %s2536_s2 = smov 112   ;;  %vm176_vm2 = vcmask 64512  }
  0x28   :  { %2262 = vmatprep.subr.mxu0 %v72_v1  ;;  %2273 = vmatprep.mubr.msk.f32.mxu1 %vm2532_vm1, %v2531_v6  ;;  %s2537_s20 = smov 64  }
  0x29   :  { %2263 = vmatpush3.msra.mxu0 %v72_v1 }
  0x2a   :  { %2264 = vmatprep.subr.mxu0 %v71_v3 }
  0x2b   :  { %2265 = vmatpush3.msra.mxu0 %v71_v3 }
  0x2c   :  { %2266 = vmatprep.subr.mxu0 %v70_v4 }
  0x2d   :  { %2267 = vmatpush3.msra.mxu0 %v70_v4 }
  0x2e   :  { %2269 = vmatmul.mubr.msk.f32.vlgmr.msra.gmra.mxu0 %vm81_vm0, %v2601_v5  ;;  %2281 = vmatprep.subr.mxu0 %v2531_v6 }
  0x2f   :  { %2283 = vmatprep.mubr.msk.f32.mxu0 %vm2532_vm1, %v2531_v6 }
  0xee   :  { %v2270_v8 = vpop.f32.mrf.mxu0 }
  0xef   :  { %v2614_v9 = vadd.f32 %v2270_v8, %v2168_v7 }
  0xf0   :  { %v154_v10 = vpop.f32.mrf.mxu0 }
  0xf1   :  { %v155_v11 = vadd.f32 %v2168_v7, %v154_v10 }
  0xf3   :  { %172 = vrot.lane.b32.xlu1 %v155_v11, %s2533_s17  ;;  %168 = vrot.lane.b32.xlu0 %v155_v11, %s2534_s18 }
  0xf7   :  { %174 = vrot.lane.b32.xlu1 %v155_v11, %s2535_s19  ;;  %170 = vrot.lane.b32.xlu0 %v155_v11, %s2536_s2 }
 0x165   :  { %v2620_v12 = vpop.permute.xlu1 %172  ;;  %v169_v13 = vpop.permute.xlu0 %168 }
 0x166   :  { %251 = vrot.lane.b32.xlu0 %v169_v13, %s2535_s19 }
 0x169   :  { %v175_v14 = vpop.permute.xlu1 %174  ;;  %v2623_v15 = vpop.permute.xlu0 %170 }
 0x16a   :  { %2272 = vmatpush3.xpose.msk.msra.mxu1 %vm176_vm2, %v175_v14  ;;  %403 = vrot.lane.b32.xlu0 %v2620_v12, %s2535_s19  ;;  %v2695_v14 = vld [vmem:[#allocation7] sm:$0xff] }
 0x16b   :  { %327 = vrot.lane.b32.xlu1 %v2623_v15, %s2535_s19  ;;  %2276 = vmatprep.subr.mxu1 %v2531_v6 }
 0x16d   :  { %2274 = vmatmul.mubr.msk.f32.vlgmr.msra.gmra.mxu1 %vm176_vm2, %v155_v11 }
 0x16e   :  { %2278 = vmatprep.mubr.msk.f32.mxu1 %vm2532_vm1, %v2531_v6 }
 0x1d8   :  { %v252_v16 = vpop.permute.xlu0 %251 }
 0x1d9   :  { %2277 = vmatpush3.xpose.msk.msra.mxu1 %vm176_vm2, %v252_v16  ;;  %v2709_v16 = vld [vmem:[#allocation7 + $0x10] sm:$0xff] }
 0x1da   :  { %2286 = vmatprep.subr.mxu1 %v2531_v6 }
 0x1dc   :  { %2279 = vmatmul.mubr.msk.f32.vlgmr.msra.gmra.mxu1 %vm176_vm2, %v169_v13  ;;  %v404_v17 = vpop.permute.xlu0 %403 }
 0x1dd   :  { %v328_v18 = vpop.permute.xlu1 %327  ;;  %2287 = vmatpush3.xpose.msk.msra.mxu1 %vm176_vm2, %v404_v17  ;;  %2288 = vmatprep.mubr.msk.f32.mxu1 %vm2532_vm1, %v2531_v6 }
 0x1de   :  { %2282 = vmatpush3.xpose.msk.msra.mxu0 %vm176_vm2, %v328_v18  ;;  %2296 = vmatprep.subr.mxu1 %v2531_v6 }
 0x1df   :  { %2291 = vmatprep.subr.mxu0 %v2531_v6 }
 0x1e0   :  { %2289 = vmatmul.mubr.msk.f32.vlgmr.msra.gmra.mxu1 %vm176_vm2, %v2620_v12 }
 0x1e1   :  { %2284 = vmatmul.mubr.msk.f32.vlgmr.msra.gmra.mxu0 %vm176_vm2, %v2623_v15  ;;  %2298 = vmatprep.mubr.msk.f32.mxu1 %vm2532_vm1, %v2531_v6 }
 0x1e2   :  { %2293 = vmatprep.mubr.msk.f32.mxu0 %vm2532_vm1, %v2531_v6 }
 0x22d   :  { %v247_v19 = vpop.f32.mrf.mxu1 }
 0x22e   :  { %v479_v20 = vmul.f32 0.35355338, %v247_v19  ;;  %v2716_v19 = vld [vmem:[#allocation7 + $0x18] sm:$0xff] }
 0x22f   :  { %v2275_v21 = vpop.f32.mrf.mxu1 }
 0x230   :  { %v483_v22 = vsel %vm176_vm2, %v479_v20, -inf }
 0x231   :  { %484 = vmax.xlane.f32.xlu1 %v483_v22 }
 0x29c   :  { %v323_v23 = vpop.f32.mrf.mxu1 }
 0x29d   :  { %v480_v24 = vmul.f32 0.35355338, %v323_v23 }
 0x29e   :  { %v2280_v25 = vpop.f32.mrf.mxu1 }
 0x29f   :  { %v486_v26 = vsel %vm176_vm2, %v480_v24, -inf }
 0x2a0   :  { %487 = vmax.xlane.f32.xlu0 %v486_v26  ;;  %v475_v27 = vpop.f32.mrf.mxu1 }
 0x2a1   :  { %v399_v28 = vpop.f32.mrf.mxu0  ;;  %v482_v29 = vmul.f32 0.35355338, %v475_v27 }
 0x2a2   :  { %v481_v30 = vmul.f32 0.35355338, %v399_v28  ;;  %v2290_v31 = vpop.f32.mrf.mxu1 }
 0x2a3   :  { %v2285_v32 = vpop.f32.mrf.mxu0  ;;  %v492_v33 = vsel %vm176_vm2, %v482_v29, -inf }
 0x2a4   :  { %v489_v34 = vsel %vm176_vm2, %v481_v30, -inf  ;;  %493 = vmax.xlane.f32.xlu1 %v492_v33 }
 0x2a5   :  { %490 = vmax.xlane.f32.xlu0 %v489_v34 }
 0x2b5   :  { %603 = vrot.lane.b32.xlu1 %v169_v13, %s2537_s20 }
 0x2ba   :  { %v485_v35 = vpop.xlane.xlu1 %484 }
 0x2bb   :  { %527 = vrot.lane.b32.xlu0 %v155_v11, %s2537_s20  ;;  %v495_v36 = vsub.f32 %v479_v20, %v485_v35 }
 0x2bd   :  { %v499_v37 = vmul.f32 1.442695, %v495_v36 }
 0x2bf   :  { %2404 = vpow2.f32 %v499_v37 }
 0x2cc   :  { %v2405_v38 = vpop.eup %2404 }
 0x2cd   :  { %v507_v39 = vsel %vm176_vm2, %v2405_v38, 0.0 }
 0x2da   :  { %508 = vadd.xlane.f32.xlu0 %v507_v39 }
 0x329   :  { %v488_v40 = vpop.xlane.xlu0 %487 }
 0x32a   :  { %v496_v41 = vsub.f32 %v480_v24, %v488_v40 }
 0x32c   :  { %v501_v42 = vmul.f32 1.442695, %v496_v41 }
 0x32d   :  { %v494_v43 = vpop.xlane.xlu1 %493 }
 0x32e   :  { %2406 = vpow2.f32 %v501_v42  ;;  %v498_v44 = vsub.f32 %v482_v29, %v494_v43  ;;  %v491_v45 = vpop.xlane.xlu0 %490 }
 0x32f   :  { %v497_v46 = vsub.f32 %v481_v30, %v491_v45 }
 0x330   :  { %v505_v47 = vmul.f32 1.442695, %v498_v44 }
 0x331   :  { %v503_v48 = vmul.f32 1.442695, %v497_v46  ;;  %v604_v49 = vpop.permute.xlu1 %603 }
 0x332   :  { %2408 = vpow2.f32 %v505_v47  ;;  %v528_v50 = vpop.permute.xlu0 %527  ;;  %2297 = vmatpush3.msra.mxu1 %v604_v49 }
 0x333   :  { %2410 = vpow2.f32 %v503_v48  ;;  %2292 = vmatpush3.msra.mxu0 %v528_v50  ;;  %2306 = vmatprep.subr.mxu1 %v2531_v6 }
 0x334   :  { %2301 = vmatprep.subr.mxu0 %v2531_v6 }
 0x33b   :  { %v2407_v51 = vpop.eup %2406 }
 0x33c   :  { %v510_v52 = vsel %vm176_vm2, %v2407_v51, 0.0 }
 0x33d   :  { %511 = vadd.xlane.f32.xlu1 %v510_v52 }
 0x33f   :  { %v2409_v53 = vpop.eup %2408 }
 0x340   :  { %v2411_v54 = vpop.eup %2410  ;;  %v516_v55 = vsel %vm176_vm2, %v2409_v53, 0.0 }
 0x341   :  { %517 = vadd.xlane.f32.xlu1 %v516_v55  ;;  %v513_v56 = vsel %vm176_vm2, %v2411_v54, 0.0 }
 0x342   :  { %514 = vadd.xlane.f32.xlu0 %v513_v56 }
 0x352   :  { %679 = vrot.lane.b32.xlu1 %v2623_v15, %s2537_s20  ;;  %v2705_v15 = vld [vmem:[#allocation7 + $0x8] sm:$0xff] }
 0x356   :  { %1131 = vrot.lane.b32.xlu1 %v2614_v9, %s2534_s18 }
 0x358   :  { %755 = vrot.lane.b32.xlu0 %v2620_v12, %s2537_s20 }
 0x35a   :  { %1135 = vrot.lane.b32.xlu1 %v2614_v9, %s2533_s17 }
 0x35c   :  { %1133 = vrot.lane.b32.xlu0 %v2614_v9, %s2536_s2 }
 0x360   :  { %1137 = vrot.lane.b32.xlu0 %v2614_v9, %s2535_s19 }
 0x363   :  { %v509_v57 = vpop.xlane.xlu0 %508 }
 0x364   :  { %2412 = vrcp.f32 %v509_v57 }
 0x371   :  { %v2413_v58 = vpop.eup %2412 }
 0x372   :  { %v523_v59 = vmul.f32 %v2413_v58, %v2405_v38 }
 0x374   :  { %2294 = vmatmul.mubr.msk.f32.vlgmr.msra.gmra.mxu0 %vm176_vm2, %v523_v59 }
 0x375   :  { %2303 = vmatprep.mubr.msk.f32.mxu0 %vm2532_vm1, %v2531_v6 }
 0x3c6   :  { %v512_v60 = vpop.xlane.xlu1 %511 }
 0x3c7   :  { %2414 = vrcp.f32 %v512_v60 }
 0x3ca   :  { %v518_v61 = vpop.xlane.xlu1 %517 }
 0x3cb   :  { %2416 = vrcp.f32 %v518_v61  ;;  %v515_v62 = vpop.xlane.xlu0 %514 }
 0x3cc   :  { %2418 = vrcp.f32 %v515_v62 }
 0x3ce   :  { %v680_v63 = vpop.permute.xlu1 %679 }
 0x3cf   :  { %v756_v0 = vpop.permute.xlu0 %755  ;;  %2302 = vmatpush3.msra.mxu0 %v680_v63 }
 0x3d0   :  { %2311 = vmatprep.subr.mxu0 %v2531_v6 }
 0x3d2   :  { %v2679_v1 = vpop.permute.xlu1 %1131 }
 0x3d3   :  { %v2681_v3 = vpop.permute.xlu0 %1133  ;;  %1213 = vrot.lane.b32.xlu1 %v2679_v1, %s2535_s19 }
 0x3d4   :  { %v2415_v4 = vpop.eup %2414  ;;  %1289 = vrot.lane.b32.xlu0 %v2681_v3, %s2535_s19 }
 0x3d5   :  { %v524_v7 = vmul.f32 %v2415_v4, %v2407_v51 }
 0x3d6   :  { %v2687_v8 = vpop.permute.xlu1 %1135 }
 0x3d7   :  { %2299 = vmatmul.mubr.msk.f32.vlgmr.msra.gmra.mxu1 %vm176_vm2, %v524_v7  ;;  %1365 = vrot.lane.b32.xlu1 %v2687_v8, %s2535_s19  ;;  %v1138_v25 = vpop.permute.xlu0 %1137 }
 0x3d8   :  { %v2417_v10 = vpop.eup %2416  ;;  %2307 = vmatpush3.msra.mxu1 %v756_v0  ;;  %2308 = vmatprep.mubr.msk.f32.mxu1 %vm2532_vm1, %v2531_v6 }
 0x3d9   :  { %v2419_v11 = vpop.eup %2418  ;;  %v526_v12 = vmul.f32 %v2417_v10, %v2409_v53  ;;  %2316 = vmatprep.subr.mxu1 %v2531_v6 }
 0x3da   :  { %v525_v13 = vmul.f32 %v2419_v11, %v2411_v54 }
 0x3db   :  { %2309 = vmatmul.mubr.msk.f32.vlgmr.msra.gmra.mxu1 %vm176_vm2, %v526_v12 }
 0x3dc   :  { %2304 = vmatmul.mubr.msk.f32.vlgmr.msra.gmra.mxu0 %vm176_vm2, %v525_v13  ;;  %2318 = vmatprep.mubr.msk.f32.mxu1 %vm2532_vm1, %v2531_v6 }
 0x3dd   :  { %2312 = vmatpush3.msra.mxu0 %v2695_v14  ;;  %2313 = vmatprep.mubr.msk.f32.mxu0 %vm2532_vm1, %v2531_v6 }
 0x3de   :  { %2321 = vmatprep.subr.mxu0 %v2531_v6  ;;  %2317 = vmatpush3.msra.mxu1 %v2705_v15 }
 0x3df   :  { %2326 = vmatprep.subr.mxu1 %v2531_v6 }
 0x434   :  { %v599_v17 = vpop.f32.mrf.mxu0 }
 0x435   :  { %2314 = vmatmul.mubr.msk.f32.vlgmr.msra.gmra.mxu0 %vm176_vm2, %v599_v17 }
 0x436   :  { %v2295_v18 = vpop.f32.mrf.mxu0  ;;  %2322 = vmatpush3.msra.mxu0 %v2709_v16  ;;  %2323 = vmatprep.mubr.msk.f32.mxu0 %vm2532_vm1, %v2531_v6 }
 0x437   :  { %2331 = vmatprep.subr.mxu0 %v2531_v6 }
 0x445   :  { %v1214_v22 = vpop.permute.xlu1 %1213 }
 0x446   :  { %v1290_v29 = vpop.permute.xlu0 %1289 }
 0x449   :  { %v1366_v28 = vpop.permute.xlu1 %1365 }
 0x497   :  { %v675_v20 = vpop.f32.mrf.mxu1 }
 0x498   :  { %2319 = vmatmul.mubr.msk.f32.vlgmr.msra.gmra.mxu1 %vm176_vm2, %v675_v20 }
 0x499   :  { %v2300_v21 = vpop.f32.mrf.mxu1  ;;  %2327 = vmatpush3.msra.mxu1 %v2716_v19  ;;  %2328 = vmatprep.mubr.msk.f32.mxu1 %vm2532_vm1, %v2531_v6 }
 0x49a   :  { %2336 = vmatprep.subr.mxu1 %v2531_v6 }
 0x49b   :  { %v827_v23 = vpop.f32.mrf.mxu1 }
 0x49c   :  { %v751_v24 = vpop.f32.mrf.mxu0  ;;  %2329 = vmatmul.mubr.msk.f32.vlgmr.msra.gmra.mxu1 %vm176_vm2, %v827_v23 }
 0x49d   :  { %2324 = vmatmul.mubr.msk.f32.vlgmr.msra.gmra.mxu0 %vm176_vm2, %v751_v24  ;;  %2337 = vmatpush3.xpose.msk.msra.mxu1 %vm176_vm2, %v1214_v22  ;;  %v2310_v26 = vpop.f32.mrf.mxu1 }
 0x49e   :  { %2332 = vmatpush3.xpose.msk.msra.mxu0 %vm176_vm2, %v1138_v25  ;;  %v2305_v27 = vpop.f32.mrf.mxu0  ;;  %2333 = vmatprep.mubr.msk.f32.mxu0 %vm2532_vm1, %v2531_v6 }
 0x49f   :  { %2338 = vmatprep.mubr.msk.f32.mxu1 %vm2532_vm1, %v2531_v6  ;;  %2341 = vmatprep.subr.mxu0 %v2531_v6 }
 0x4a0   :  { %2346 = vmatprep.subr.mxu1 %v2531_v6  ;;  %2339 = vmatmul.mubr.msk.f32.vlgmr.msra.gmra.mxu1 %vm176_vm2, %v2679_v1 }
 0x4a1   :  { %2334 = vmatmul.mubr.msk.f32.vlgmr.msra.gmra.mxu0 %vm176_vm2, %v2614_v9  ;;  %2347 = vmatpush3.xpose.msk.msra.mxu1 %vm176_vm2, %v1366_v28  ;;  %v2777_v28 = vld [vmem:[%s2838_s4] ss:$0 sm:$0xff] }
 0x4a2   :  { %2342 = vmatpush3.xpose.msk.msra.mxu0 %vm176_vm2, %v1290_v29  ;;  %2343 = vmatprep.mubr.msk.f32.mxu0 %vm2532_vm1, %v2531_v6 }
 0x4a3   :  { %2348 = vmatprep.mubr.msk.f32.mxu1 %vm2532_vm1, %v2531_v6  ;;  %2351 = vmatprep.subr.mxu0 %v2531_v6 }
 0x4a4   :  { %2349 = vmatmul.mubr.msk.f32.vlgmr.msra.gmra.mxu1 %vm176_vm2, %v2687_v8  ;;  %2356 = vmatprep.subr.mxu1 %v2531_v6 }
 0x4a5   :  { %2344 = vmatmul.mubr.msk.f32.vlgmr.msra.gmra.mxu0 %vm176_vm2, %v2681_v3  ;;  %2358 = vmatprep.mubr.msk.f32.mxu1 %vm2532_vm1, %v2531_v6 }
 0x4a6   :  { %2353 = vmatprep.mubr.msk.f32.mxu0 %vm2532_vm1, %v2531_v6 }
 0x4f5   :  { %v900_v30 = vpop.f32.mrf.mxu0 }
 0x4f6   :  { %v1123_v33 = vsel %vm81_vm0, %v900_v30, 0.0 }
 0x4f7   :  { %v2315_v31 = vpop.f32.mrf.mxu0 }
 0x558   :  { %v973_v32 = vpop.f32.mrf.mxu1 }
 0x559   :  { %v1124_v34 = vsel %vm81_vm0, %v973_v32, 0.0 }
 0x55a   :  { %v1125_v35 = vadd.f32 %v1124_v34, %v1123_v33  ;;  %v2320_v36 = vpop.f32.mrf.mxu1 }
 0x55c   :  { %v1119_v37 = vpop.f32.mrf.mxu1 }
 0x55d   :  { %v1046_v38 = vpop.f32.mrf.mxu0  ;;  %v1128_v43 = vsel %vm81_vm0, %v1119_v37, 0.0 }
 0x55e   :  { %v1126_v39 = vsel %vm81_vm0, %v1046_v38, 0.0  ;;  %v2330_v40 = vpop.f32.mrf.mxu1 }
 0x55f   :  { %v1127_v41 = vadd.f32 %v1126_v39, %v1125_v35  ;;  %v2325_v42 = vpop.f32.mrf.mxu0 }
 0x560   :  { %v1285_v44 = vpop.f32.mrf.mxu1 }
 0x561   :  { %v1129_v45 = vadd.f32 %v1128_v43, %v1127_v41  ;;  %v1209_v46 = vpop.f32.mrf.mxu0  ;;  %v1442_v47 = vmul.f32 0.35355338, %v1285_v44 }
 0x562   :  { %v1441_v48 = vmul.f32 0.35355338, %v1209_v46  ;;  %v2340_v49 = vpop.f32.mrf.mxu1 }
 0x563   :  { %v2335_v50 = vpop.f32.mrf.mxu0  ;;  %v1448_v51 = vsel %vm176_vm2, %v1442_v47, -inf  ;;  %v2099_v29 = vadd.f32 %v2777_v28, %v1129_v45 }
 0x564   :  { %1449 = vmax.xlane.f32.xlu1 %v1448_v51  ;;  %v1437_v52 = vpop.f32.mrf.mxu1  ;;  %v1445_v53 = vsel %vm176_vm2, %v1441_v48, -inf }
 0x565   :  { %1446 = vmax.xlane.f32.xlu0 %v1445_v53  ;;  %v1361_v54 = vpop.f32.mrf.mxu0  ;;  %v1444_v58 = vmul.f32 0.35355338, %v1437_v52  ;;  %v2101_v30 = vadd.f32 %v2099_v29, %v2597_v2 }
 0x566   :  { %v1443_v55 = vmul.f32 0.35355338, %v1361_v54  ;;  %v2350_v56 = vpop.f32.mrf.mxu1 }
 0x567   :  { %v2345_v57 = vpop.f32.mrf.mxu0  ;;  %v1454_v60 = vsel %vm176_vm2, %v1444_v58, -inf  ;;  %v2103_v31 = vsel %vm81_vm0, %v2101_v30, 0.0 }
 0x568   :  { %v1451_v59 = vsel %vm176_vm2, %v1443_v55, -inf }
 0x569   :  { %1452 = vmax.xlane.f32.xlu0 %v1451_v59 }
 0x56d   :  { %1455 = vmax.xlane.f32.xlu0 %v1454_v60 }
 0x575   :  { %1489 = vrot.lane.b32.xlu1 %v2614_v9, %s2537_s20 }
 0x5ed   :  { %v1450_v61 = vpop.xlane.xlu1 %1449 }
 0x5ee   :  { %v1458_v62 = vsub.f32 %v1442_v47, %v1450_v61  ;;  %v1447_v63 = vpop.xlane.xlu0 %1446 }
 0x5ef   :  { %v1457_v0 = vsub.f32 %v1441_v48, %v1447_v63 }
 0x5f0   :  { %v1463_v4 = vmul.f32 1.442695, %v1458_v62 }
 0x5f1   :  { %v1461_v7 = vmul.f32 1.442695, %v1457_v0  ;;  %v1490_v10 = vpop.permute.xlu1 %1489 }
 0x5f2   :  { %2420 = vpow2.f32 %v1463_v4  ;;  %v1453_v11 = vpop.xlane.xlu0 %1452  ;;  %2352 = vmatpush3.msra.mxu0 %v1490_v10 }
 0x5f3   :  { %2422 = vpow2.f32 %v1461_v7  ;;  %v1459_v12 = vsub.f32 %v1443_v55, %v1453_v11  ;;  %2361 = vmatprep.subr.mxu0 %v2531_v6 }
 0x5f5   :  { %v1465_v13 = vmul.f32 1.442695, %v1459_v12 }
 0x5f6   :  { %v1456_v17 = vpop.xlane.xlu0 %1455 }
 0x5f7   :  { %2424 = vpow2.f32 %v1465_v13  ;;  %v1460_v18 = vsub.f32 %v1444_v58, %v1456_v17  ;;  %v2205_v58 = vld [vmem:[%s2840_s6] ss:$0 sm:$0xff] }
 0x5f9   :  { %v1467_v20 = vmul.f32 1.442695, %v1460_v18 }
 0x5fb   :  { %2426 = vpow2.f32 %v1467_v20 }
 0x5ff   :  { %v2421_v9 = vpop.eup %2420 }
 0x600   :  { %v2423_v21 = vpop.eup %2422  ;;  %v1472_v22 = vsel %vm176_vm2, %v2421_v9, 0.0 }
 0x601   :  { %1473 = vadd.xlane.f32.xlu0 %v1472_v22  ;;  %v1469_v23 = vsel %vm176_vm2, %v2423_v21, 0.0 }
 0x602   :  { %1470 = vadd.xlane.f32.xlu1 %v1469_v23 }
 0x604   :  { %v2425_v24 = vpop.eup %2424 }
 0x605   :  { %v1475_v25 = vsel %vm176_vm2, %v2425_v24, 0.0 }
 0x606   :  { %1476 = vadd.xlane.f32.xlu1 %v1475_v25 }
 0x608   :  { %v2427_v26 = vpop.eup %2426 }
 0x609   :  { %v1478_v27 = vsel %vm176_vm2, %v2427_v26, 0.0 }
 0x60a   :  { %1479 = vadd.xlane.f32.xlu0 %v1478_v27 }
 0x617   :  { %1641 = vrot.lane.b32.xlu1 %v2681_v3, %s2537_s20 }
 0x61b   :  { %1717 = vrot.lane.b32.xlu1 %v2687_v8, %s2537_s20 }
 0x620   :  { %1565 = vrot.lane.b32.xlu0 %v2679_v1, %s2537_s20 }
 0x63f   :  { %2104 = vadd.xlane.f32.xlu0 %v2103_v31 }
 0x68a   :  { %v1474_v32 = vpop.xlane.xlu0 %1473 }
 0x68b   :  { %v1471_v3 = vpop.xlane.xlu1 %1470  ;;  %2428 = vrcp.f32 %v1474_v32 }
 0x68c   :  { %2430 = vrcp.f32 %v1471_v3 }
 0x68f   :  { %v1477_v8 = vpop.xlane.xlu1 %1476 }
 0x690   :  { %2432 = vrcp.f32 %v1477_v8 }
 0x693   :  { %v1480_v33 = vpop.xlane.xlu0 %1479  ;;  %v1642_v1 = vpop.permute.xlu1 %1641 }
 0x694   :  { %2434 = vrcp.f32 %v1480_v33 }
 0x697   :  { %v1566_v34 = vpop.permute.xlu0 %1565  ;;  %v1718_v38 = vpop.permute.xlu1 %1717 }
 0x698   :  { %v2429_v35 = vpop.eup %2428  ;;  %2357 = vmatpush3.msra.mxu1 %v1566_v34 }
 0x699   :  { %v2431_v36 = vpop.eup %2430  ;;  %2366 = vmatprep.subr.mxu1 %v2531_v6  ;;  %v1486_v37 = vmul.f32 %v2429_v35, %v2421_v9 }
 0x69a   :  { %v1485_v2 = vmul.f32 %v2431_v36, %v2423_v21 }
 0x69b   :  { %2359 = vmatmul.mubr.msk.f32.vlgmr.msra.gmra.mxu1 %vm176_vm2, %v1486_v37 }
 0x69c   :  { %2354 = vmatmul.mubr.msk.f32.vlgmr.msra.gmra.mxu0 %vm176_vm2, %v1485_v2  ;;  %2367 = vmatpush3.msra.mxu1 %v1718_v38 }
 0x69d   :  { %v2433_v39 = vpop.eup %2432  ;;  %2362 = vmatpush3.msra.mxu0 %v1642_v1  ;;  %2363 = vmatprep.mubr.msk.f32.mxu0 %vm2532_vm1, %v2531_v6 }
 0x69e   :  { %v1487_v40 = vmul.f32 %v2433_v39, %v2425_v24  ;;  %2368 = vmatprep.mubr.msk.f32.mxu1 %vm2532_vm1, %v2531_v6  ;;  %2371 = vmatprep.subr.mxu0 %v2531_v6 }
 0x69f   :  { %2376 = vmatprep.subr.mxu1 %v2531_v6 }
 0x6a0   :  { %2364 = vmatmul.mubr.msk.f32.vlgmr.msra.gmra.mxu0 %vm176_vm2, %v1487_v40 }
 0x6a1   :  { %v2435_v41 = vpop.eup %2434  ;;  %2372 = vmatpush3.msra.mxu0 %v2695_v14  ;;  %2373 = vmatprep.mubr.msk.f32.mxu0 %vm2532_vm1, %v2531_v6 }
 0x6a2   :  { %v1488_v42 = vmul.f32 %v2435_v41, %v2427_v26  ;;  %2381 = vmatprep.subr.mxu0 %v2531_v6 }
 0x6a4   :  { %2369 = vmatmul.mubr.msk.f32.vlgmr.msra.gmra.mxu1 %vm176_vm2, %v1488_v42 }
 0x6a5   :  { %2377 = vmatpush3.msra.mxu1 %v2705_v15  ;;  %2378 = vmatprep.mubr.msk.f32.mxu1 %vm2532_vm1, %v2531_v6 }
 0x6a6   :  { %2386 = vmatprep.subr.mxu1 %v2531_v6 }
 0x6c8   :  { %v2105_v43 = vpop.xlane.xlu0 %2104 }
 0x6c9   :  { %v2110_v44 = vmul.f32 0.03125, %v2105_v43 }
 0x6cb   :  { %v2112_v45 = vsub.f32 %v2101_v30, %v2110_v44 }
 0x6cd   :  { %v2114_v46 = vmul.f32 %v2112_v45, %v2112_v45 }
 0x6cf   :  { %v2116_v14 = vsel %vm81_vm0, %v2114_v46, 0.0 }
 0x6d0   :  { %2117 = vadd.xlane.f32.xlu0 %v2116_v14 }
 0x759   :  { %v2118_v47 = vpop.xlane.xlu0 %2117 }
 0x75a   :  { %v2122_v48 = vmul.f32 0.03125, %v2118_v47 }
 0x75b   :  { %v1637_v49 = vpop.f32.mrf.mxu1 }
 0x75c   :  { %v2124_v50 = vadd.f32 1e-05, %v2122_v48  ;;  %v1561_v51 = vpop.f32.mrf.mxu0  ;;  %2379 = vmatmul.mubr.msk.f32.vlgmr.msra.gmra.mxu1 %vm176_vm2, %v1637_v49 }
 0x75d   :  { %2374 = vmatmul.mubr.msk.f32.vlgmr.msra.gmra.mxu0 %vm176_vm2, %v1561_v51  ;;  %v2360_v15 = vpop.f32.mrf.mxu1  ;;  %2387 = vmatpush3.msra.mxu1 %v2716_v19  ;;  %v2204_v19 = vld [vmem:[%s2839_s5] ss:$0 sm:$0xff]  ;;  %s2538_s5 = smov [#allocation8]  }
 0x75e   :  { %2436 = vrsqrt.f32 %v2124_v50  ;;  %v2355_v52 = vpop.f32.mrf.mxu0  ;;  %2382 = vmatpush3.msra.mxu0 %v2709_v16  ;;  %2383 = vmatprep.mubr.msk.f32.mxu0 %vm2532_vm1, %v2531_v6  ;;  %s2155_s6 = sshll.u32 %s2538_s5, 4  ;;  %s2156_s6 = int_to_ptr.vmem [resolvable:$true] %s2155_s6 }
 0x75f   :  { %2388 = vmatprep.mubr.msk.f32.mxu1 %vm2532_vm1, %v2531_v6  ;;  %s2500_s26 = scalar_lea.vmem %s2156_s6, 256  ;;  %p2505_p2 = scmp.lt.s32.totalorder %s2156_s6, %s2156_s6 }
 0x760   :  { %v1713_v53 = vpop.f32.mrf.mxu0  ;;  %p2501_p1 = scmp.ne.s32.totalorder %s2156_s6, %s2500_s26  ;;  %p2506_p3 = scmp.lt.s32.totalorder %s2500_s26, %s2500_s26 }
 0x761   :  { %2384 = vmatmul.mubr.msk.f32.vlgmr.msra.gmra.mxu0 %vm176_vm2, %v1713_v53 }
 0x762   :  { %v2365_v54 = vpop.f32.mrf.mxu0  ;;  %p2507_p4 = por %p2506_p3, %p2505_p2 }
 0x764   :  { %v1789_v55 = vpop.f32.mrf.mxu1  ;;  %p2508_p5 = pnand %p2507_p4, %p2501_p1 }
 0x765   :  { %2389 = vmatmul.mubr.msk.f32.vlgmr.msra.gmra.mxu1 %vm176_vm2, %v1789_v55 }
 0x766   :  { %v2370_v56 = vpop.f32.mrf.mxu1 }
 0x76b   :  { %v2437_v57 = vpop.eup %2436 }
 0x76c   :  { %v2128_v16 = vmul.f32 %v2437_v57, %v2112_v45 }
 0x76e   :  { %v2137_v59 = vmul.f32 %v2204_v19, %v2128_v16 }
 0x770   :  { %v2146_v6 = vadd.f32 %v2205_v58, %v2137_v59 }
 0x772   :  { %2148 = vst.msk [vmem:[#allocation8] sm:$0xff] %vm81_vm0, %v2146_v6 }
 0x81c   :  { %v1935_v60 = vpop.f32.mrf.mxu1 }
 0x81d   :  { %v1862_v61 = vpop.f32.mrf.mxu0  ;;  %v2086_v4 = vsel %vm81_vm0, %v1935_v60, 0.0 }
 0x81e   :  { %v2380_v62 = vpop.f32.mrf.mxu1  ;;  %v2085_v0 = vsel %vm81_vm0, %v1862_v61, 0.0 }
 0x81f   :  { %v2375_v63 = vpop.f32.mrf.mxu0  ;;  %v2087_v11 = vadd.f32 %v2086_v4, %v2085_v0 }
 0x821   :  { %v2008_v7 = vpop.f32.mrf.mxu0 }
 0x822   :  { %v2088_v10 = vsel %vm81_vm0, %v2008_v7, 0.0 }
 0x823   :  { %v2385_v12 = vpop.f32.mrf.mxu0  ;;  %v2089_v13 = vadd.f32 %v2088_v10, %v2087_v11 }
 0x825   :  { %v2081_v17 = vpop.f32.mrf.mxu1 }
 0x826   :  { %v2090_v18 = vsel %vm81_vm0, %v2081_v17, 0.0 }
 0x827   :  { %v2091_v20 = vadd.f32 %v2090_v18, %v2089_v13  ;;  %v2390_v9 = vpop.f32.mrf.mxu1 }
 0x829   :  { %v2100_v21 = vadd.f32 %v2777_v28, %v2091_v20 }
 0x82b   :  { %v2102_v22 = vadd.f32 %v2100_v21, %v2601_v5 }
 0x82d   :  { %v2106_v23 = vsel %vm81_vm0, %v2102_v22, 0.0 }
 0x82e   :  { %2107 = vadd.xlane.f32.xlu1 %v2106_v23 }
 0x8b7   :  { %v2108_v24 = vpop.xlane.xlu1 %2107 }
 0x8b8   :  { %v2111_v25 = vmul.f32 0.03125, %v2108_v24 }
 0x8ba   :  { %v2113_v26 = vsub.f32 %v2102_v22, %v2111_v25 }
 0x8bc   :  { %v2115_v27 = vmul.f32 %v2113_v26, %v2113_v26 }
 0x8be   :  { %v2119_v29 = vsel %vm81_vm0, %v2115_v27, 0.0 }
 0x8bf   :  { %2120 = vadd.xlane.f32.xlu0 %v2119_v29 }
 0x948   :  { %v2121_v30 = vpop.xlane.xlu0 %2120 }
 0x949   :  { %v2123_v31 = vmul.f32 0.03125, %v2121_v30 }
 0x94b   :  { %v2125_v32 = vadd.f32 1e-05, %v2123_v31 }
 0x94d   :  { %2438 = vrsqrt.f32 %v2125_v32 }
 0x95a   :  { %v2439_v3 = vpop.eup %2438 }
 0x95b   :  { %v2129_v8 = vmul.f32 %v2439_v3, %v2113_v26 }
 0x95d   :  { %v2138_v28 = vmul.f32 %v2204_v19, %v2129_v8 }
 0x95f   :  { %v2147_v5 = vadd.f32 %v2205_v58, %v2138_v28 }
 0x961   :  { %2149 = vst.msk [vmem:[#allocation8 + $0x8] sm:$0xff] %vm81_vm0, %v2147_v5 }
 0x962   :  { %2511 = shalt.err (!%p2508_p5)
}
 0x963   :  { %2161 = dma.vmem_to_hbm [thread:$0]  %s2156_s6, 256, %s2841_s7, [#allocation4], %s2528_s29, %s2528_s29, %s2529_s30  }
 0x964   :  { %2524 = dma.done.wait [#allocation4], 256  }
 0x965   :  { %2525 = vsyncadd [#allocation4], 4294967040 }
 0x966   :  { %2165 = vsyncpa [#allocation3], 1 }
 0x967   :  { %2166 = vsyncpa [#allocation6], 1 }
 0x968   :  { %2167 = vsyncpa [#allocation4], 1 }

</bundles_post_ra>
